<compile_context>
chip_gen: v7x
topology: tpu7x:2x2x1
jax: 0.10.0
libtpu: 0.0.40
codegen_flags: <defaults>
</compile_context>

<pallas_src>
import functools

import jax
import jax.numpy as jnp
from jax import lax
from jax.experimental import pallas as pl
from jax.experimental.pallas import tpu as pltpu


def _round_up(v, m):
    return (v + m - 1) // m * m


def _ffn_kernel(x_ref, w1_ref, b1_ref, w2_ref, b2_ref, o_ref, acc_ref):
    # x_ref:  (TM, Dm)        token tile
    # w1_ref: (TF, Dm)        rows kf of linear_1 weight (PyTorch layout: out, in)
    # b1_ref: (1, TF)         slice kf of linear_1 bias
    # w2_ref: (Dm, TF)        cols kf of linear_2 weight (PyTorch layout: out, in)
    # b2_ref: (1, Dm)         linear_2 bias (folded into the kf==0 init)
    # o_ref:  (TM, Dm)        output tile (written once, at kf==last)
    # acc_ref:(TM, Dm) f32    accumulator resident across the d_ff grid axis
    kf = pl.program_id(1)

    @pl.when(kf == 0)
    def _():
        # Fold linear_2 bias into the accumulator init; finalize is a pure cast.
        acc_ref[...] = jnp.broadcast_to(
            b2_ref[...].astype(jnp.float32), acc_ref.shape)

    # h = relu(x @ W1[kf].T + b1[kf]); contraction over d_model (last dim of
    # both operands) -> no transposed weight copy ever materialized in HBM.
    h = lax.dot_general(
        x_ref[...], w1_ref[...],
        dimension_numbers=(((1,), (1,)), ((), ())),
        preferred_element_type=jnp.float32)
    h = jnp.maximum(h + b1_ref[...].astype(jnp.float32), 0.0)  # bias+relu: VPU
    # Dropout == identity in eval mode.
    # TODO(synk): training-mode dropout (pltpu.prng_seed + stateful_bernoulli
    #             keyed on program_id) is not wired in.

    # acc += h @ W2[:, kf].T   (partial product over this d_ff tile)
    acc_ref[...] += lax.dot_general(
        h.astype(w2_ref.dtype), w2_ref[...],
        dimension_numbers=(((1,), (1,)), ((), ())),
        preferred_element_type=jnp.float32)

    @pl.when(kf == pl.num_programs(1) - 1)
    def _():
        o_ref[...] = acc_ref[...].astype(o_ref.dtype)


@functools.partial(jax.jit, static_argnames=("tm", "tf"))
def feed_forward_block(x, w1, b1, w2, b2, *, tm=256, tf=512):
    """x: (batch, seq, d_model); weights in PyTorch nn.Linear layout.

    w1: (d_ff, d_model), b1: (d_ff,), w2: (d_model, d_ff), b2: (d_model,)
    Returns (batch, seq, d_model).
    """
    batch, seq, d_model = x.shape
    d_ff = w1.shape[0]
    tokens = batch * seq
    itemsize = jnp.dtype(x.dtype).itemsize

    # Lane/sublane-aligned sizes (padding is a no-op when already aligned).
    dm_p = _round_up(d_model, 128)
    tm = max(8, min(tm, _round_up(tokens, 8)))
    tf = max(128, min(tf, _round_up(d_ff, 128)))

    # Working-set estimate: double-buffered x/W1/b1/W2/b2/out tiles + f32 acc
    # and the f32 (TM, TF) intermediate.
    def vmem_needed(tm_, tf_):
        dbl = 2 * itemsize * (2 * tm_ * dm_p + 2 * tf_ * dm_p + tf_ + dm_p)
        return dbl + 4 * tm_ * (dm_p + tf_)

    budget = 40 * 1024 * 1024  # leave headroom under v7x's 64 MiB / TC
    while vmem_needed(tm, tf) > budget and tf > 128:
        tf = max(128, _round_up(tf // 2, 128))
    while vmem_needed(tm, tf) > budget and tm > 8:
        tm = max(8, _round_up(tm // 2, 8))

    tokens_p = _round_up(tokens, tm)
    dff_p = _round_up(d_ff, tf)

    def maybe_pad(a, pads):
        return a if all(p == (0, 0) for p in pads) else jnp.pad(a, pads)

    x2d = maybe_pad(x.reshape(tokens, d_model),
                    ((0, tokens_p - tokens), (0, dm_p - d_model)))
    w1_p = maybe_pad(w1, ((0, dff_p - d_ff), (0, dm_p - d_model)))
    b1_p = maybe_pad(b1.reshape(1, d_ff), ((0, 0), (0, dff_p - d_ff)))
    w2_p = maybe_pad(w2, ((0, dm_p - d_model), (0, dff_p - d_ff)))
    b2_p = maybe_pad(b2.reshape(1, d_model), ((0, 0), (0, dm_p - d_model)))

    grid = (tokens_p // tm, dff_p // tf)

    vmem_limit = int(min(max(int(1.5 * vmem_needed(tm, tf)), 8 * 1024 * 1024),
                         64 * 1024 * 1024))

    cost = pl.CostEstimate(
        flops=4 * tokens * d_model * d_ff,          # two matmuls, 2 flops/MAC
        transcendentals=0,
        bytes_accessed=(x.size + w1.size + b1.size + w2.size + b2.size
                        + tokens * d_model) * itemsize)

    out2d = pl.pallas_call(
        _ffn_kernel,
        out_shape=jax.ShapeDtypeStruct((tokens_p, dm_p), x.dtype),
        grid_spec=pltpu.PrefetchScalarGridSpec(
            num_scalar_prefetch=0,
            grid=grid,
            in_specs=[
                pl.BlockSpec((tm, dm_p), lambda i, kf: (i, 0)),    # x tile
                pl.BlockSpec((tf, dm_p), lambda i, kf: (kf, 0)),   # W1 row tile
                pl.BlockSpec((1, tf), lambda i, kf: (0, kf)),      # b1 slice
                pl.BlockSpec((dm_p, tf), lambda i, kf: (0, kf)),   # W2 col tile
                pl.BlockSpec((1, dm_p), lambda i, kf: (0, 0)),     # b2
            ],
            out_specs=pl.BlockSpec((tm, dm_p), lambda i, kf: (i, 0)),
            scratch_shapes=[pltpu.VMEM((tm, dm_p), jnp.float32)],
        ),
        compiler_params=pltpu.CompilerParams(
            dimension_semantics=("parallel", "arbitrary"),
            vmem_limit_bytes=vmem_limit),
        cost_estimate=cost,
    )(x2d, w1_p, b1_p, w2_p, b2_p)

    return out2d[:tokens, :d_model].reshape(batch, seq, d_model)


def _ref_ffn(x, w1, b1, w2, b2):
    h = jnp.maximum(x @ w1.T + b1, 0.0)
    return h @ w2.T + b2


if __name__ == "__main__":
    batch, seq, d_model, d_ff = 2, 8, 128, 256   # small, lane-dense test shapes

    key = jax.random.PRNGKey(0)
    kx, k1, kb1, k2, kb2 = jax.random.split(key, 5)

    x = jax.random.normal(kx, (batch, seq, d_model), dtype=jnp.float32)
    # PyTorch nn.Linear shapes: weight (out, in), bias (out,)
    bound1 = 1.0 / (d_model ** 0.5)
    bound2 = 1.0 / (d_ff ** 0.5)
    w1 = jax.random.uniform(k1, (d_ff, d_model), jnp.float32, -bound1, bound1)
    b1 = jax.random.uniform(kb1, (d_ff,), jnp.float32, -bound1, bound1)
    w2 = jax.random.uniform(k2, (d_model, d_ff), jnp.float32, -bound2, bound2)
    b2 = jax.random.uniform(kb2, (d_model,), jnp.float32, -bound2, bound2)

    out = feed_forward_block(x, w1, b1, w2, b2)
    jax.block_until_ready(out)

    ref = _ref_ffn(x, w1, b1, w2, b2)
    assert out.shape == (batch, seq, d_model)
    assert jnp.allclose(out, ref, atol=1e-4, rtol=1e-4), "mismatch vs reference"

    print("KERNEL_OK")
</pallas_src>

<mosaic_0001>
module attributes {stable_mosaic.version = 11 : i64} {
  func.func @_ffn_kernel(%arg0: i32, %arg1: i32, %arg2: memref<16x128xf32, #tpu.memory_space<vmem>>, %arg3: memref<256x128xf32, #tpu.memory_space<vmem>>, %arg4: memref<1x256xf32, #tpu.memory_space<vmem>>, %arg5: memref<128x256xf32, #tpu.memory_space<vmem>>, %arg6: memref<1x128xf32, #tpu.memory_space<vmem>>, %arg7: memref<16x128xf32, #tpu.memory_space<vmem>>, %arg8: memref<16x128xf32, #tpu.memory_space<vmem>>) attributes {dimension_semantics = [#tpu.dimension_semantics<parallel>, #tpu.dimension_semantics<arbitrary>], iteration_bounds = array<i64: 1, 1>, scalar_prefetch = 0 : i64, scratch_operands = 1 : i64, tpu.core_type = #tpu.core_type<tc>, window_params = [{transform_indices = @transform_0, window_bounds = array<i64: 16, 128>}, {transform_indices = @transform_1, window_bounds = array<i64: 256, 128>}, {transform_indices = @transform_2, window_bounds = array<i64: 1, 256>}, {transform_indices = @transform_3, window_bounds = array<i64: 128, 256>}, {pipeline_mode = #tpu.pipeline_mode<synchronous>, transform_indices = @transform_4, window_bounds = array<i64: 1, 128>}, {transform_indices = @transform_5, window_bounds = array<i64: 16, 128>}]} {
    %c0_i32 = arith.constant 0 : i32
    %0 = arith.cmpi eq, %arg1, %c0_i32 : i32
    %1 = arith.extui %0 : i1 to i32
    %c0_i32_0 = arith.constant 0 : i32
    %2 = arith.cmpi ne, %1, %c0_i32_0 : i32
    scf.if %2 {
      %c0_16 = arith.constant 0 : index
      %c0_17 = arith.constant 0 : index
      %19 = vector.load %arg6[%c0_16, %c0_17] : memref<1x128xf32, #tpu.memory_space<vmem>>, vector<1x128xf32>
      %20 = vector.shape_cast %19 : vector<1x128xf32> to vector<1x128xf32>
      %21 = vector.broadcast %20 : vector<1x128xf32> to vector<16x128xf32>
      %c0_18 = arith.constant 0 : index
      %c0_19 = arith.constant 0 : index
      %22 = vector.load %arg8[%c0_18, %c0_19] : memref<16x128xf32, #tpu.memory_space<vmem>>, vector<16x128xf32>
      tpu.vector_store %arg8[%c0_18, %c0_19], %21 {strides = array<i32>} : memref<16x128xf32, #tpu.memory_space<vmem>>, vector<16x128xf32>,
    } else {
    }
    %c0 = arith.constant 0 : index
    %c0_1 = arith.constant 0 : index
    %3 = vector.load %arg2[%c0, %c0_1] : memref<16x128xf32, #tpu.memory_space<vmem>>, vector<16x128xf32>
    %c0_2 = arith.constant 0 : index
    %c0_3 = arith.constant 0 : index
    %4 = vector.load %arg3[%c0_2, %c0_3] : memref<256x128xf32, #tpu.memory_space<vmem>>, vector<256x128xf32>
    %cst = arith.constant dense<0.000000e+00> : vector<16x256xf32>
    %5 = tpu.matmul %3, %4, %cst {dimension_numbers = #tpu.dot_dimension_numbers<[1], [1], [0], [0], [0, 0, 1, 0], [], []>} : vector<16x128xf32>, vector<256x128xf32>, vector<16x256xf32> -> vector<16x256xf32>
    %c0_4 = arith.constant 0 : index
    %c0_5 = arith.constant 0 : index
    %6 = vector.load %arg4[%c0_4, %c0_5] : memref<1x256xf32, #tpu.memory_space<vmem>>, vector<1x256xf32>
    %7 = vector.broadcast %6 : vector<1x256xf32> to vector<16x256xf32>
    %8 = arith.addf %5, %7 : vector<16x256xf32>
    %cst_6 = arith.constant 0.000000e+00 : f32
    %9 = vector.broadcast %cst_6 : f32 to vector<16x256xf32>
    %10 = arith.maximumf %8, %9 : vector<16x256xf32>
    %c0_7 = arith.constant 0 : index
    %c0_8 = arith.constant 0 : index
    %11 = vector.load %arg8[%c0_7, %c0_8] : memref<16x128xf32, #tpu.memory_space<vmem>>, vector<16x128xf32>
    %c0_9 = arith.constant 0 : index
    %c0_10 = arith.constant 0 : index
    %12 = vector.load %arg5[%c0_9, %c0_10] : memref<128x256xf32, #tpu.memory_space<vmem>>, vector<128x256xf32>
    %cst_11 = arith.constant dense<0.000000e+00> : vector<16x128xf32>
    %13 = tpu.matmul %10, %12, %cst_11 {dimension_numbers = #tpu.dot_dimension_numbers<[1], [1], [0], [0], [0, 0, 1, 0], [], []>} : vector<16x256xf32>, vector<128x256xf32>, vector<16x128xf32> -> vector<16x128xf32>
    %14 = arith.addf %11, %13 : vector<16x128xf32>
    %c0_12 = arith.constant 0 : index
    %c0_13 = arith.constant 0 : index
    %15 = vector.load %arg8[%c0_12, %c0_13] : memref<16x128xf32, #tpu.memory_space<vmem>>, vector<16x128xf32>
    tpu.vector_store %arg8[%c0_12, %c0_13], %14 {strides = array<i32>} : memref<16x128xf32, #tpu.memory_space<vmem>>, vector<16x128xf32>,
    %c0_i32_14 = arith.constant 0 : i32
    %16 = arith.cmpi eq, %arg1, %c0_i32_14 : i32
    %17 = arith.extui %16 : i1 to i32
    %c0_i32_15 = arith.constant 0 : i32
    %18 = arith.cmpi ne, %17, %c0_i32_15 : i32
    scf.if %18 {
      %c0_16 = arith.constant 0 : index
      %c0_17 = arith.constant 0 : index
      %19 = vector.load %arg8[%c0_16, %c0_17] : memref<16x128xf32, #tpu.memory_space<vmem>>, vector<16x128xf32>
      %c0_18 = arith.constant 0 : index
      %c0_19 = arith.constant 0 : index
      %20 = vector.load %arg7[%c0_18, %c0_19] : memref<16x128xf32, #tpu.memory_space<vmem>>, vector<16x128xf32>
      tpu.vector_store %arg7[%c0_18, %c0_19], %19 {strides = array<i32>} : memref<16x128xf32, #tpu.memory_space<vmem>>, vector<16x128xf32>,
    } else {
    }
    return
  }
  func.func @transform_0(%arg0: i32, %arg1: i32) -> (i32, i32) {
    %c0_i32 = arith.constant 0 : i32
    %c0_i32_0 = arith.constant 0 : i32
    return %arg0, %c0_i32 : i32, i32
  }
  func.func @transform_1(%arg0: i32, %arg1: i32) -> (i32, i32) {
    %c0_i32 = arith.constant 0 : i32
    %c0_i32_0 = arith.constant 0 : i32
    return %arg1, %c0_i32 : i32, i32
  }
  func.func @transform_2(%arg0: i32, %arg1: i32) -> (i32, i32) {
    %c0_i32 = arith.constant 0 : i32
    %c0_i32_0 = arith.constant 0 : i32
    return %c0_i32, %arg1 : i32, i32
  }
  func.func @transform_3(%arg0: i32, %arg1: i32) -> (i32, i32) {
    %c0_i32 = arith.constant 0 : i32
    %c0_i32_0 = arith.constant 0 : i32
    return %c0_i32, %arg1 : i32, i32
  }
  func.func @transform_4(%arg0: i32, %arg1: i32) -> (i32, i32) {
    %c0_i32 = arith.constant 0 : i32
    %c0_i32_0 = arith.constant 0 : i32
    %c0_i32_1 = arith.constant 0 : i32
    return %c0_i32, %c0_i32_0 : i32, i32
  }
  func.func @transform_5(%arg0: i32, %arg1: i32) -> (i32, i32) {
    %c0_i32 = arith.constant 0 : i32
    %c0_i32_0 = arith.constant 0 : i32
    return %arg0, %c0_i32 : i32, i32
  }
}

</mosaic_0001>

<bundles_post_ra>
// kernel: feed_forward_block.1
= control target key start
LH: loop header
LB: loop body
LE: loop exit
PB: predicated region body
PF: predicated region fallthrough
CT: control target
= control target key end

     0   :  { %10 = vsyncpa [#allocation4], 0  ;;  %s655_s0 = inlined_call_operand.hbm [shape: f32[16,128], index: 0, kind: input, shape index: {}]   ;;  %s656_s1 = inlined_call_operand.hbm [shape: f32[256,128], index: 1, kind: input, shape index: {}]   ;;  %s657_s2 = inlined_call_operand.vmem [shape: f32[1,256], index: 2, kind: input, shape index: {}]   ;;  %s658_s3 = inlined_call_operand.hbm [shape: f32[128,256], index: 3, kind: input, shape index: {}]   ;;  %s659_s4 = inlined_call_operand.vmem [shape: f32[1,128], index: 4, kind: input, shape index: {}]   ;;  %s660_s5 = inlined_call_operand.hbm [shape: f32[16,128], index: 5, kind: output, shape index: {}]  }
   0x1   :  { %11 = vsyncpa [#allocation7], 0 }
   0x2   :  { %12 = vsyncpa [#allocation5], 0  ;;  %s543_s18 = smov [#allocation6]   ;;  %s544_s20 = smov [#allocation3]  }
   0x3   :  { %s30_s19 = sshll.u32 %s543_s18, 4  ;;  %s18_s21 = sshll.u32 %s544_s20, 4  ;;  %s31_s19 = int_to_ptr.vmem [resolvable:$true] %s30_s19  ;;  %s581_s21 = int_to_ptr.vmem [resolvable:$true] %s18_s21 }
   0x4   :  { %s449_s24 = scalar_lea.hbm %s656_s1, 4096 }
   0x5   :  { %p450_p0 = scmp.ne.s32.totalorder %s656_s1, %s449_s24  ;;  %p453_p1 = scmp.lt.u32.totalorder %s449_s24, %s656_s1 }
   0x7   :  { %p455_p2 = pnand %p453_p1, %p450_p0 }
   0x9   :  { %458 = shalt.err (!%p455_p2)
}
   0xa   :  { %s459_s29 = scalar_lea.vmem %s31_s19, 4096  ;;  %p464_p4 = scmp.lt.s32.totalorder %s31_s19, %s31_s19 }
   0xb   :  { %p460_p3 = scmp.ne.s32.totalorder %s31_s19, %s459_s29  ;;  %p465_p5 = scmp.lt.s32.totalorder %s459_s29, %s459_s29 }
   0xd   :  { %p466_p6 = por %p465_p5, %p464_p4 }
   0xf   :  { %p467_p7 = pnand %p466_p6, %p460_p3 }
  0x11   :  { %470 = shalt.err (!%p467_p7)
}
  0x12   :  { %s545_s30 = smov 128   ;;  %s546_s6 = smov 8  }
  0x13   :  { %36 = dma.hbm_to_vmem [thread:$0]  %s656_s1, 4096, %s31_s19, [#allocation7], %s545_s30, %s545_s30, %s546_s6  }
  0x14   :  { %s471_s11 = scalar_lea.hbm %s655_s0, 256 }
  0x15   :  { %p472_p8 = scmp.ne.s32.totalorder %s655_s0, %s471_s11  ;;  %p475_p9 = scmp.lt.u32.totalorder %s471_s11, %s655_s0 }
  0x17   :  { %p477_p10 = pnand %p475_p9, %p472_p8 }
  0x19   :  { %480 = shalt.err (!%p477_p10)
}
  0x1a   :  { %s481_s16 = scalar_lea.vmem %s581_s21, 256  ;;  %p486_p12 = scmp.lt.s32.totalorder %s581_s21, %s581_s21 }
  0x1b   :  { %p482_p11 = scmp.ne.s32.totalorder %s581_s21, %s481_s16  ;;  %p487_p13 = scmp.lt.s32.totalorder %s481_s16, %s481_s16 }
  0x1d   :  { %p488_p0 = por %p487_p13, %p486_p12 }
  0x1f   :  { %p489_p1 = pnand %p488_p0, %p482_p11 }
  0x21   :  { %492 = shalt.err (!%p489_p1)
}
  0x22   :  { %24 = dma.hbm_to_vmem [thread:$0]  %s655_s0, 256, %s581_s21, [#allocation4], %s545_s30, %s545_s30, %s546_s6  }
  0x23   :  { %s547_s18 = smov [#allocation8]   ;;  %s493_s23 = scalar_lea.hbm %s658_s3, 4096 }
  0x24   :  { %s44_s19 = sshll.u32 %s547_s18, 4  ;;  %p494_p2 = scmp.ne.s32.totalorder %s658_s3, %s493_s23  ;;  %s45_s19 = int_to_ptr.vmem [resolvable:$true] %s44_s19 }
  0x25   :  { %p497_p3 = scmp.lt.u32.totalorder %s493_s23, %s658_s3 }
  0x27   :  { %p499_p4 = pnand %p497_p3, %p494_p2 }
  0x29   :  { %502 = shalt.err (!%p499_p4)
}
  0x2a   :  { %s503_s28 = scalar_lea.vmem %s45_s19, 4096  ;;  %p508_p6 = scmp.lt.s32.totalorder %s45_s19, %s45_s19 }
  0x2b   :  { %p504_p5 = scmp.ne.s32.totalorder %s45_s19, %s503_s28  ;;  %p509_p7 = scmp.lt.s32.totalorder %s503_s28, %s503_s28 }
  0x2d   :  { %p510_p8 = por %p509_p7, %p508_p6 }
  0x2f   :  { %p511_p9 = pnand %p510_p8, %p504_p5 }
  0x31   :  { %514 = shalt.err (!%p511_p9)
}
  0x32   :  { %s548_s0 = smov 256   ;;  %s549_s21 = smov 16  }
  0x33   :  { %50 = dma.hbm_to_vmem [thread:$0]  %s658_s3, 4096, %s45_s19, [#allocation7], %s548_s0, %s548_s0, %s549_s21  }
  0x34   :  { %537 = dma.done.wait [#allocation4], 256  }
  0x35   :  { %538 = vsyncadd [#allocation4], 4294967040 }
  0x36   :  { %539 = dma.done.wait [#allocation7], 8192  }
  0x37   :  { %540 = vsyncadd [#allocation7], 4294959104  ;;  %v93_v0 = vld [vmem:[#allocation6 + $0x80] sm:$0xff]  ;;  %v94_v1 = vld [vmem:[#allocation6 + $0x88] sm:$0xff]  ;;  %s550_s10 = smov [#allocation9]  }
  0x38   :  { %v77_v2 = vld [vmem:[#allocation6] sm:$0xff]  ;;  %v377_v3 = vpack.c.bf16 %v94_v1, %v93_v0  ;;  %v78_v4 = vld [vmem:[#allocation6 + $0x8] sm:$0xff]  ;;  %v95_v5 = vld [vmem:[#allocation6 + $0x90] sm:$0xff]  ;;  %s327_s11 = sshll.u32 %s550_s10, 4  ;;  %s328_s11 = int_to_ptr.vmem [resolvable:$true] %s327_s11 }
  0x39   :  { %v96_v6 = vld [vmem:[#allocation6 + $0x98] sm:$0xff]  ;;  %v379_v7 = vpack.c.bf16 %v78_v4, %v77_v2  ;;  %v79_v9 = vld [vmem:[#allocation6 + $0x10] sm:$0xff]  ;;  %v97_v11 = vld [vmem:[#allocation6 + $0xa0] sm:$0xff]  ;;  %s515_s12 = scalar_lea.vmem %s328_s11, 256  ;;  %p520_p11 = scmp.lt.s32.totalorder %s328_s11, %s328_s11 }
  0x3a   :  { %v381_v8 = vpack.c.bf16 %v96_v6, %v95_v5  ;;  %378 = vmatprep.subr.bf16.mxu0 %v377_v3  ;;  %v80_v10 = vld [vmem:[#allocation6 + $0x18] sm:$0xff]  ;;  %v98_v12 = vld [vmem:[#allocation6 + $0xa8] sm:$0xff]  ;;  %v630_v15 = vld [vmem:[#allocation3] sm:$0xff]  ;;  %p516_p10 = scmp.ne.s32.totalorder %s328_s11, %s515_s12  ;;  %p521_p12 = scmp.lt.s32.totalorder %s515_s12, %s515_s12 }
  0x3b   :  { %380 = vmatpush3.bf16.xpose.msra.mxu0 %v379_v7  ;;  %v383_v13 = vpack.c.bf16 %v80_v10, %v79_v9  ;;  %v385_v14 = vpack.c.bf16 %v98_v12, %v97_v11  ;;  %373 = vmatprep.mubr.f32.mxu0 %v630_v15  ;;  %v205_v16 = vld [vmem:[#allocation8 + $0x8] sm:$0xff]  ;;  %v207_v17 = vld [vmem:[#allocation8 + $0x18] sm:$0xff]  ;;  %v204_v19 = vld [vmem:[#allocation8] sm:$0xff] }
  0x3c   :  { %382 = vmatprep.subr.bf16.mxu0 %v381_v8  ;;  %v409_v18 = vpack.c.bf16 %v207_v17, %v205_v16  ;;  %v206_v20 = vld [vmem:[#allocation8 + $0x10] sm:$0xff]  ;;  %v209_v21 = vld [vmem:[#allocation8 + $0x28] sm:$0xff]  ;;  %v81_v22 = vld [vmem:[#allocation6 + $0x20] sm:$0xff]  ;;  %p522_p13 = por %p521_p12, %p520_p11 }
  0x3d   :  { %v82_v23 = vld [vmem:[#allocation6 + $0x28] sm:$0xff]  ;;  %v411_v24 = vpack.c.bf16 %v206_v20, %v204_v19  ;;  %v211_v25 = vld [vmem:[#allocation8 + $0x38] sm:$0xff]  ;;  %v99_v26 = vld [vmem:[#allocation6 + $0xb0] sm:$0xff] }
  0x3e   :  { %v100_v27 = vld [vmem:[#allocation6 + $0xb8] sm:$0xff]  ;;  %410 = vmatprep.subr.bf16.mxu1 %v409_v18  ;;  %v413_v28 = vpack.c.bf16 %v211_v25, %v209_v21  ;;  %v387_v29 = vpack.c.bf16 %v82_v23, %v81_v22  ;;  %v208_v30 = vld [vmem:[#allocation8 + $0x20] sm:$0xff]  ;;  %v210_v31 = vld [vmem:[#allocation8 + $0x30] sm:$0xff]  ;;  %p523_p0 = pnand %p522_p13, %p516_p10 }
  0x3f   :  { %412 = vmatpush1.bf16.xpose.msra.mxu1 %v411_v24  ;;  %v389_v32 = vpack.c.bf16 %v100_v27, %v99_v26  ;;  %v213_v33 = vld [vmem:[#allocation8 + $0x48] sm:$0xff]  ;;  %v215_v34 = vld [vmem:[#allocation8 + $0x58] sm:$0xff]  ;;  %v415_v35 = vpack.c.bf16 %v210_v31, %v208_v30  ;;  %v83_v37 = vld [vmem:[#allocation6 + $0x30] sm:$0xff] }
  0x40   :  { %414 = vmatprep.subr.bf16.mxu1 %v413_v28  ;;  %v417_v36 = vpack.c.bf16 %v215_v34, %v213_v33  ;;  %v84_v38 = vld [vmem:[#allocation6 + $0x38] sm:$0xff]  ;;  %v101_v39 = vld [vmem:[#allocation6 + $0xc0] sm:$0xff]  ;;  %v102_v40 = vld [vmem:[#allocation6 + $0xc8] sm:$0xff] }
  0x41   :  { %v391_v41 = vpack.c.bf16 %v84_v38, %v83_v37  ;;  %v212_v42 = vld [vmem:[#allocation8 + $0x40] sm:$0xff]  ;;  %v214_v43 = vld [vmem:[#allocation8 + $0x50] sm:$0xff]  ;;  %v393_v44 = vpack.c.bf16 %v102_v40, %v101_v39  ;;  %v217_v45 = vld [vmem:[#allocation8 + $0x68] sm:$0xff] }
  0x42   :  { %v219_v46 = vld [vmem:[#allocation8 + $0x78] sm:$0xff]  ;;  %v419_v47 = vpack.c.bf16 %v214_v43, %v212_v42  ;;  %v85_v49 = vld [vmem:[#allocation6 + $0x40] sm:$0xff]  ;;  %v86_v50 = vld [vmem:[#allocation6 + $0x48] sm:$0xff] }
  0x43   :  { %384 = vmatpush3.bf16.xpose.msra.mxu0 %v383_v13  ;;  %v421_v48 = vpack.c.bf16 %v219_v46, %v217_v45  ;;  %v103_v51 = vld [vmem:[#allocation6 + $0xd0] sm:$0xff]  ;;  %v104_v52 = vld [vmem:[#allocation6 + $0xd8] sm:$0xff]  ;;  %v395_v53 = vpack.c.bf16 %v86_v50, %v85_v49  ;;  %v216_v54 = vld [vmem:[#allocation8 + $0x60] sm:$0xff] }
  0x44   :  { %386 = vmatprep.subr.bf16.mxu0 %v385_v14  ;;  %v218_v55 = vld [vmem:[#allocation8 + $0x70] sm:$0xff]  ;;  %v397_v56 = vpack.c.bf16 %v104_v52, %v103_v51  ;;  %v221_v57 = vld [vmem:[#allocation8 + $0x88] sm:$0xff]  ;;  %v223_v58 = vld [vmem:[#allocation8 + $0x98] sm:$0xff] }
  0x45   :  { %v423_v59 = vpack.c.bf16 %v218_v55, %v216_v54  ;;  %v425_v60 = vpack.c.bf16 %v223_v58, %v221_v57  ;;  %v87_v61 = vld [vmem:[#allocation6 + $0x50] sm:$0xff]  ;;  %v88_v62 = vld [vmem:[#allocation6 + $0x58] sm:$0xff]  ;;  %v105_v63 = vld [vmem:[#allocation6 + $0xe0] sm:$0xff] }
  0x46   :  { %v106_v0 = vld [vmem:[#allocation6 + $0xe8] sm:$0xff]  ;;  %v399_v1 = vpack.c.bf16 %v88_v62, %v87_v61  ;;  %v220_v2 = vld [vmem:[#allocation8 + $0x80] sm:$0xff]  ;;  %v222_v3 = vld [vmem:[#allocation8 + $0x90] sm:$0xff] }
  0x47   :  { %416 = vmatpush1.bf16.xpose.msra.mxu1 %v415_v35  ;;  %v401_v4 = vpack.c.bf16 %v106_v0, %v105_v63  ;;  %v225_v5 = vld [vmem:[#allocation8 + $0xa8] sm:$0xff]  ;;  %v227_v6 = vld [vmem:[#allocation8 + $0xb8] sm:$0xff]  ;;  %v427_v7 = vpack.c.bf16 %v222_v3, %v220_v2  ;;  %v89_v9 = vld [vmem:[#allocation6 + $0x60] sm:$0xff]  ;;  %v111_v35 = vlaneseq }
  0x48   :  { %418 = vmatprep.subr.bf16.mxu1 %v417_v36  ;;  %v429_v8 = vpack.c.bf16 %v227_v6, %v225_v5  ;;  %v90_v10 = vld [vmem:[#allocation6 + $0x68] sm:$0xff]  ;;  %v107_v11 = vld [vmem:[#allocation6 + $0xf0] sm:$0xff]  ;;  %v108_v12 = vld [vmem:[#allocation6 + $0xf8] sm:$0xff] }
  0x49   :  { %v403_v13 = vpack.c.bf16 %v90_v10, %v89_v9  ;;  %v224_v14 = vld [vmem:[#allocation8 + $0xa0] sm:$0xff]  ;;  %v226_v16 = vld [vmem:[#allocation8 + $0xb0] sm:$0xff]  ;;  %v405_v17 = vpack.c.bf16 %v108_v12, %v107_v11  ;;  %v229_v18 = vld [vmem:[#allocation8 + $0xc8] sm:$0xff]  ;;  %v112_v36 = vshrl.u32 %v111_v35, 7 }
  0x4a   :  { %v231_v19 = vld [vmem:[#allocation8 + $0xd8] sm:$0xff]  ;;  %v431_v20 = vpack.c.bf16 %v226_v16, %v224_v14  ;;  %v91_v22 = vld [vmem:[#allocation6 + $0x70] sm:$0xff]  ;;  %v228_v25 = vld [vmem:[#allocation8 + $0xc0] sm:$0xff] }
  0x4b   :  { %388 = vmatpush3.bf16.xpose.msra.mxu0 %v387_v29  ;;  %v433_v21 = vpack.c.bf16 %v231_v19, %v229_v18  ;;  %v92_v23 = vld [vmem:[#allocation6 + $0x78] sm:$0xff]  ;;  %v230_v26 = vld [vmem:[#allocation8 + $0xd0] sm:$0xff]  ;;  %v233_v27 = vld [vmem:[#allocation8 + $0xe8] sm:$0xff]  ;;  %v113_v37 = vsub.s32 0, %v112_v36  ;;  %v117_v39 = vsub.s32 1, %v112_v36 }
  0x4c   :  { %390 = vmatprep.subr.bf16.mxu0 %v389_v32  ;;  %v407_v24 = vpack.c.bf16 %v92_v23, %v91_v22  ;;  %v235_v28 = vld [vmem:[#allocation8 + $0xf8] sm:$0xff]  ;;  %v435_v29 = vpack.c.bf16 %v230_v26, %v228_v25  ;;  %v232_v32 = vld [vmem:[#allocation8 + $0xe0] sm:$0xff]  ;;  %v234_v33 = vld [vmem:[#allocation8 + $0xf0] sm:$0xff] }
  0x4d   :  { %v437_v30 = vpack.c.bf16 %v235_v28, %v233_v27  ;;  %v76_v31 = vld [vmem:[#allocation3 + $0x8] sm:$0xff]  ;;  %v439_v34 = vpack.c.bf16 %v234_v33, %v232_v32  ;;  %v109_v38 = vld [vmem:[%s657_s2] sm:$0x3] }
  0x4e   :  { %v114_v40 = vrot.slane %v109_v38, %v113_v37 }
  0x4f   :  { %420 = vmatpush1.bf16.xpose.msra.mxu1 %v419_v47 }
  0x50   :  { %422 = vmatprep.subr.bf16.mxu1 %v421_v48 }
  0x53   :  { %392 = vmatpush3.bf16.xpose.msra.mxu0 %v391_v41  ;;  %v118_v41 = vrot.slane %v109_v38, %v117_v39 }
  0x54   :  { %394 = vmatprep.subr.bf16.mxu0 %v393_v44 }
  0x57   :  { %424 = vmatpush1.bf16.xpose.msra.mxu1 %v423_v59 }
  0x58   :  { %426 = vmatprep.subr.bf16.mxu1 %v425_v60 }
  0x5b   :  { %396 = vmatpush3.bf16.xpose.msra.mxu0 %v395_v53  ;;  %v340_v53 = vld [vmem:[%s659_s4] ss:$0 sm:$0xff] }
  0x5c   :  { %398 = vmatprep.subr.bf16.mxu0 %v397_v56 }
  0x5f   :  { %428 = vmatpush1.bf16.xpose.msra.mxu1 %v427_v7 }
  0x60   :  { %430 = vmatprep.subr.bf16.mxu1 %v429_v8 }
  0x63   :  { %400 = vmatpush3.bf16.xpose.msra.mxu0 %v399_v1 }
  0x64   :  { %402 = vmatprep.subr.bf16.mxu0 %v401_v4 }
  0x67   :  { %432 = vmatpush1.bf16.xpose.msra.mxu1 %v431_v20 }
  0x68   :  { %434 = vmatprep.subr.bf16.mxu1 %v433_v21 }
  0x6b   :  { %404 = vmatpush3.bf16.xpose.msra.mxu0 %v403_v13 }
  0x6c   :  { %406 = vmatprep.subr.bf16.mxu0 %v405_v17 }
  0x6f   :  { %436 = vmatpush1.bf16.xpose.msra.mxu1 %v435_v29 }
  0x70   :  { %438 = vmatprep.subr.bf16.mxu1 %v437_v30 }
  0x73   :  { %408 = vmatpush3.bf16.xpose.msra.mxu0 %v407_v24 }
  0x77   :  { %440 = vmatpush1.bf16.xpose.msra.mxu1 %v439_v34 }
  0x7a   :  { %374 = vmatmul.mubr.f32.vlgmr.msra.gmra.mrb[0].mxu0 %v630_v15 }
  0x7b   :  { %375 = vmatprep.mubr.f32.mxu0 %v76_v31 }
  0x7e   :  { %376 = vmatmul.mubr.f32.gmra.mrb[2].mxu0 %v76_v31 }
 0x14d   :  { %v187_v42 = vpop.f32.mrb[0].mxu0 }
 0x14e   :  { %v188_v43 = vadd.f32 %v187_v42, %v114_v40  ;;  %v189_v44 = vpop.f32.mrb[1].mxu0 }
 0x14f   :  { %v190_v15 = vadd.f32 %v189_v44, %v118_v41 }
 0x150   :  { %v198_v47 = vmax.f32 %v188_v43, 0.0 }
 0x151   :  { %v193_v45 = vpop.f32.mrb[2].mxu0  ;;  %v199_v46 = vmax.f32 %v190_v15, 0.0 }
 0x152   :  { %v194_v48 = vadd.f32 %v193_v45, %v114_v40  ;;  %v195_v49 = vpop.f32.mrb[3].mxu0 }
 0x153   :  { %v196_v50 = vadd.f32 %v195_v49, %v118_v41  ;;  %300 = vmatprep.mubr.f32.mxu1 %v199_v46 }
 0x154   :  { %301 = vmatmul.mubr.f32.vlgmr.msra.gmra.mrb[0].mxu1 %v198_v47  ;;  %v200_v52 = vmax.f32 %v194_v48, 0.0 }
 0x155   :  { %v201_v51 = vmax.f32 %v196_v50, 0.0 }
 0x157   :  { %305 = vmatprep.mubr.f32.mxu1 %v201_v51 }
 0x158   :  { %306 = vmatmul.mubr.f32.gmra.mrb[2].mxu1 %v200_v52 }
 0x227   :  { %v302_v54 = vpop.f32.mrb[0].mxu1 }
 0x228   :  { %v311_v55 = vadd.f32 %v340_v53, %v302_v54  ;;  %v304_v56 = vpop.f32.mrb[1].mxu1 }
 0x22a   :  { %320 = vst [vmem:[#allocation9] sm:$0xff] %v311_v55 }
 0x22b   :  { %v307_v57 = vpop.f32.mrb[2].mxu1 }
 0x22c   :  { %v312_v58 = vadd.f32 %v340_v53, %v307_v57  ;;  %v309_v59 = vpop.f32.mrb[3].mxu1 }
 0x22e   :  { %321 = vst [vmem:[#allocation9 + $0x8] sm:$0xff] %v312_v58 }
 0x22f   :  { %526 = shalt.err (!%p523_p0)
}
 0x230   :  { %s527_s14 = scalar_lea.hbm %s660_s5, 256 }
 0x231   :  { %p528_p1 = scmp.ne.s32.totalorder %s660_s5, %s527_s14  ;;  %p531_p2 = scmp.lt.u32.totalorder %s527_s14, %s660_s5 }
 0x233   :  { %p533_p3 = pnand %p531_p2, %p528_p1 }
 0x235   :  { %536 = shalt.err (!%p533_p3)
}
 0x236   :  { %333 = dma.vmem_to_hbm [thread:$0]  %s328_s11, 256, %s660_s5, [#allocation5], %s545_s30, %s545_s30, %s546_s6  }
 0x237   :  { %541 = dma.done.wait [#allocation5], 256  }
 0x238   :  { %542 = vsyncadd [#allocation5], 4294967040 }
 0x239   :  { %337 = vsyncpa [#allocation4], 1 }
 0x23a   :  { %338 = vsyncpa [#allocation7], 1 }
 0x23b   :  { %339 = vsyncpa [#allocation5], 1 }

</bundles_post_ra>
